<compile_context>
chip_gen: v7x
topology: tpu7x:2x2x1
jax: 0.10.0
libtpu: 0.0.40
codegen_flags: <defaults>
</compile_context>

<pallas_src>
import jax
import jax.numpy as jnp
from jax.experimental import pallas as pl
from jax.experimental.pallas import tpu as pltpu

N_IMG = 16          # the "n" of Encoder(n, device)
LATENT = 200
OUT_PAD = 256       # lane-aligned per-head column block: mu -> [0:256), log_var -> [256:512)
LRELU_SLOPE = 0.01  # nn.LeakyReLU default negative_slope
BN_EPS = 1e-5       # nn.BatchNorm2d default eps
K_PAD = 32          # im2col contraction dim (27) padded to a sublane multiple (was 128)


# ---------------------------------------------------------------------------
# Fused Pallas kernel: conv(+BN folded) -> LeakyReLU -> flatten -> heads -> sample
# ---------------------------------------------------------------------------
def _make_encoder_kernel(n_batch, oc, hw, latent, out_pad, slope):
    def kernel(p_ref, wc_ref, bc_ref, wh_ref, bh_ref, eps_ref, o_ref):
        # --- conv as im2col matmul, lane-dense output (OC, N*OH*OW) = (8, 128) ---
        # bf16 operands, f32 accumulation on the MXU.
        a = jnp.dot(wc_ref[...], p_ref[...], preferred_element_type=jnp.float32)
        a = a + bc_ref[...]                          # folded conv-bias + BN shift, (OC, 1)
        a = jnp.where(a >= 0.0, a, slope * a)        # LeakyReLU (f32, VPU)

        # --- PyTorch NCHW flatten: (OC, N*HW) -> (N, OC*HW) --------------------
        # Value-level relayout via concatenation: no scratch buffers, no
        # store->load round trip, no masked half-tile stores.
        rows = []
        for n in range(n_batch):
            blk = a[:, n * hw:(n + 1) * hw]                        # (OC, HW)
            rows.append(jnp.concatenate(
                [blk[c:c + 1, :] for c in range(oc)], axis=1))     # (1, OC*HW)
        flat = jnp.concatenate(rows, axis=0).astype(jnp.bfloat16)  # (N, OC*HW)

        # --- both Linear heads as ONE bf16 matmul vs. the 512-padded weight ----
        z = jnp.dot(flat, wh_ref[...], preferred_element_type=jnp.float32)
        z = z + bh_ref[...]                           # (N, 2*out_pad), f32
        mu = z[:, 0:out_pad]                          # lane-tile aligned split
        log_var = z[:, out_pad:2 * out_pad]

        # --- reparameterisation (eps is one 200-vector shared over the batch,
        #     matching the reference's single np.random.normal(0,1,200) draw).
        #     Padding columns are exactly zero (zero weights/bias/eps).
        out = mu + jnp.exp(log_var * 0.5) * eps_ref[...]
        o_ref[...] = out[:, 0:latent]

    return kernel


def _full_spec(shape):
    nd = len(shape)
    return pl.BlockSpec(shape, lambda i, nd=nd: (0,) * nd)


# ---------------------------------------------------------------------------
# One-time parameter preparation (hoisted out of the per-call path)
# ---------------------------------------------------------------------------
def prepare_params(params):
    """Fold BN + conv bias, merge/pad the head weights, cast matmul weights to bf16.

    Call this ONCE (e.g. at model-load time); pass the result to encoder_forward.
    """
    w = params["w_conv"]
    OC, IC, KH, KW = w.shape
    K = IC * KH * KW

    # fold BatchNorm (eval, running stats) + conv bias into the conv weights
    scale = params["gamma"] / jnp.sqrt(params["rvar"] + BN_EPS)           # (OC,)
    wf = w.reshape(OC, K) * scale[:, None]                                # (OC, K)
    wf = jnp.pad(wf, ((0, 0), (0, K_PAD - K))).astype(jnp.bfloat16)       # (OC, 32) bf16
    bc = (scale * (params["b_conv"] - params["rmean"])
          + params["beta"]).reshape(OC, 1).astype(jnp.float32)            # (OC, 1) f32

    # merge the two Linear heads (weights stored as (in, out)) into one
    # lane-aligned (D, 512) block: mu -> cols [0:200), log_var -> cols [256:456)
    D = params["w_mu"].shape[0]
    wh = jnp.zeros((D, 2 * OUT_PAD), jnp.float32)
    wh = wh.at[:, 0:LATENT].set(params["w_mu"])
    wh = wh.at[:, OUT_PAD:OUT_PAD + LATENT].set(params["w_lv"])
    wh = wh.astype(jnp.bfloat16)                                          # (512, 512) bf16

    bh = jnp.zeros((1, 2 * OUT_PAD), jnp.float32)
    bh = bh.at[0, 0:LATENT].set(params["b_mu"])
    bh = bh.at[0, OUT_PAD:OUT_PAD + LATENT].set(params["b_lv"])

    eps = jnp.zeros((1, OUT_PAD), jnp.float32)
    eps = eps.at[0, 0:LATENT].set(params["eps"])

    return {"wf": wf, "bc": bc, "wh": wh, "bh": bh, "eps": eps}


# ---------------------------------------------------------------------------
# Per-call wrapper: im2col + one pallas_call
# ---------------------------------------------------------------------------
def _im2col(x_nchw):
    """(N,3,H,W) -> (K_PAD, N*OH*OW) bf16 patch matrix, k = ic*9 + kh*3 + kw."""
    N, C, H, W = x_nchw.shape
    OH, OW = H // 2, W // 2
    K = C * 9
    x = jnp.transpose(x_nchw, (0, 2, 3, 1))                       # NHWC
    xp = jnp.pad(x, ((0, 0), (1, 1), (1, 1), (0, 0)))
    taps = [xp[:, kh:kh + 2 * OH:2, kw:kw + 2 * OW:2, :]          # (N, OH, OW, C)
            for kh in range(3) for kw in range(3)]
    p = jnp.stack(taps, axis=0)                                   # (9, N, OH, OW, C)
    p = jnp.transpose(p, (4, 0, 1, 2, 3)).reshape(K, N * OH * OW)  # (K, M)
    p = jnp.pad(p, ((0, K_PAD - K), (0, 0)))                      # (K_PAD, M)
    return p.astype(jnp.bfloat16)


def encoder_forward(x_nchw, prep):
    N, C, H, W = x_nchw.shape
    OH, OW = H // 2, W // 2
    HW = OH * OW
    OC = prep["wf"].shape[0]

    p = _im2col(x_nchw)                                           # (K_PAD, N*HW) bf16

    kernel = _make_encoder_kernel(N, OC, HW, LATENT, OUT_PAD, LRELU_SLOPE)
    args = (p, prep["wf"], prep["bc"], prep["wh"], prep["bh"], prep["eps"])
    return pl.pallas_call(
        kernel,
        out_shape=jax.ShapeDtypeStruct((N, LATENT), jnp.float32),
        grid=(1,),
        in_specs=[_full_spec(a.shape) for a in args],
        out_specs=_full_spec((N, LATENT)),
        compiler_params=pltpu.CompilerParams(
            dimension_semantics=("arbitrary",),
            # allow XLA to fuse the im2col pad/stack/transpose chain into the
            # patch-matrix operand instead of materialising it in HBM.
            allow_input_fusion=[True, False, False, False, False, False],
        ),
    )(*args)


# ---------------------------------------------------------------------------
if __name__ == "__main__":
    key = jax.random.PRNGKey(0)
    ks = jax.random.split(key, 8)

    N = 2
    x = jax.random.normal(ks[0], (N, 3, N_IMG, N_IMG), jnp.float32)

    D = 8 * (N_IMG // 2) * (N_IMG // 2)      # 512 = int(2 ** (log2(16) - 4 + 9))
    params = {
        # Conv2d(3, 8, kernel_size=3, stride=2, padding=1)
        "w_conv": jax.random.normal(ks[1], (8, 3, 3, 3), jnp.float32) * 0.1,
        "b_conv": jax.random.normal(ks[2], (8,), jnp.float32) * 0.1,
        # BatchNorm2d(8) — eval mode, freshly-initialised running stats
        "gamma": jnp.ones((8,), jnp.float32),
        "beta": jnp.zeros((8,), jnp.float32),
        "rmean": jnp.zeros((8,), jnp.float32),
        "rvar": jnp.ones((8,), jnp.float32),
        # Linear(512, 200) heads (weights stored as (in, out), PyTorch flatten row order)
        "w_mu": jax.random.normal(ks[3], (D, LATENT), jnp.float32) * 0.05,
        "b_mu": jax.random.normal(ks[4], (LATENT,), jnp.float32) * 0.05,
        "w_lv": jax.random.normal(ks[5], (D, LATENT), jnp.float32) * 0.05,
        "b_lv": jax.random.normal(ks[6], (LATENT,), jnp.float32) * 0.05,
        # reparameterisation noise (stand-in for np.random.normal(0, 1, 200))
        "eps": jax.random.normal(ks[7], (LATENT,), jnp.float32),
    }

    # one-time parameter folding, OUTSIDE the per-call path
    prep = prepare_params(params)
    prep = jax.tree_util.tree_map(jax.block_until_ready, prep)

    fwd = jax.jit(encoder_forward)
    out = fwd(x, prep)
    out = jax.block_until_ready(out)
    assert out.shape == (N, LATENT) and out.dtype == jnp.float32
    print("KERNEL_OK")
</pallas_src>

<mosaic_0001>
module attributes {stable_mosaic.version = 11 : i64} {
  func.func @kernel(%arg0: i32, %arg1: memref<32x128xbf16, #tpu.memory_space<vmem>>, %arg2: memref<8x32xbf16, #tpu.memory_space<vmem>>, %arg3: memref<8x1xf32, #tpu.memory_space<vmem>>, %arg4: memref<512x512xbf16, #tpu.memory_space<vmem>>, %arg5: memref<1x512xf32, #tpu.memory_space<vmem>>, %arg6: memref<1x256xf32, #tpu.memory_space<vmem>>, %arg7: memref<2x200xf32, #tpu.memory_space<vmem>>) attributes {dimension_semantics = [#tpu.dimension_semantics<arbitrary>], iteration_bounds = array<i64: 1>, scalar_prefetch = 0 : i64, scratch_operands = 0 : i64, tpu.core_type = #tpu.core_type<tc>, window_params = [{pipeline_mode = #tpu.pipeline_mode<synchronous>, transform_indices = @transform_0, window_bounds = array<i64: 32, 128>}, {pipeline_mode = #tpu.pipeline_mode<synchronous>, transform_indices = @transform_1, window_bounds = array<i64: 8, 32>}, {pipeline_mode = #tpu.pipeline_mode<synchronous>, transform_indices = @transform_2, window_bounds = array<i64: 8, 1>}, {pipeline_mode = #tpu.pipeline_mode<synchronous>, transform_indices = @transform_3, window_bounds = array<i64: 512, 512>}, {pipeline_mode = #tpu.pipeline_mode<synchronous>, transform_indices = @transform_4, window_bounds = array<i64: 1, 512>}, {pipeline_mode = #tpu.pipeline_mode<synchronous>, transform_indices = @transform_5, window_bounds = array<i64: 1, 256>}, {pipeline_mode = #tpu.pipeline_mode<synchronous>, transform_indices = @transform_6, window_bounds = array<i64: 2, 200>}]} {
    %c0 = arith.constant 0 : index
    %c0_0 = arith.constant 0 : index
    %0 = vector.load %arg2[%c0, %c0_0] : memref<8x32xbf16, #tpu.memory_space<vmem>>, vector<8x32xbf16>
    %c0_1 = arith.constant 0 : index
    %c0_2 = arith.constant 0 : index
    %1 = vector.load %arg1[%c0_1, %c0_2] : memref<32x128xbf16, #tpu.memory_space<vmem>>, vector<32x128xbf16>
    %cst = arith.constant dense<0.000000e+00> : vector<8x128xf32>
    %2 = tpu.matmul %0, %1, %cst {dimension_numbers = #tpu.dot_dimension_numbers<[1], [0], [0], [1], [0, 0, 1, 1], [], []>} : vector<8x32xbf16>, vector<32x128xbf16>, vector<8x128xf32> -> vector<8x128xf32>
    %c0_3 = arith.constant 0 : index
    %c0_4 = arith.constant 0 : index
    %3 = vector.load %arg3[%c0_3, %c0_4] : memref<8x1xf32, #tpu.memory_space<vmem>>, vector<8x1xf32>
    %4 = vector.broadcast %3 : vector<8x1xf32> to vector<8x128xf32>
    %5 = arith.addf %2, %4 : vector<8x128xf32>
    %cst_5 = arith.constant 0.000000e+00 : f32
    %6 = vector.broadcast %cst_5 : f32 to vector<8x128xf32>
    %7 = arith.cmpf oge, %5, %6 : vector<8x128xf32>
    %cst_6 = arith.constant 0.00999999977 : f32
    %8 = vector.broadcast %cst_6 : f32 to vector<8x128xf32>
    %9 = arith.mulf %8, %5 : vector<8x128xf32>
    %10 = arith.select %7, %5, %9 : vector<8x128xi1>, vector<8x128xf32>
    %11 = vector.extract_strided_slice %10 {offsets = [0, 0], sizes = [8, 64], strides = [1, 1]} : vector<8x128xf32> to vector<8x64xf32>
    %12 = vector.extract_strided_slice %11 {offsets = [0, 0], sizes = [1, 64], strides = [1, 1]} : vector<8x64xf32> to vector<1x64xf32>
    %13 = vector.extract_strided_slice %11 {offsets = [1, 0], sizes = [1, 64], strides = [1, 1]} : vector<8x64xf32> to vector<1x64xf32>
    %14 = vector.extract_strided_slice %11 {offsets = [2, 0], sizes = [1, 64], strides = [1, 1]} : vector<8x64xf32> to vector<1x64xf32>
    %15 = vector.extract_strided_slice %11 {offsets = [3, 0], sizes = [1, 64], strides = [1, 1]} : vector<8x64xf32> to vector<1x64xf32>
    %16 = vector.extract_strided_slice %11 {offsets = [4, 0], sizes = [1, 64], strides = [1, 1]} : vector<8x64xf32> to vector<1x64xf32>
    %17 = vector.extract_strided_slice %11 {offsets = [5, 0], sizes = [1, 64], strides = [1, 1]} : vector<8x64xf32> to vector<1x64xf32>
    %18 = vector.extract_strided_slice %11 {offsets = [6, 0], sizes = [1, 64], strides = [1, 1]} : vector<8x64xf32> to vector<1x64xf32>
    %19 = vector.extract_strided_slice %11 {offsets = [7, 0], sizes = [1, 64], strides = [1, 1]} : vector<8x64xf32> to vector<1x64xf32>
    %20 = tpu.concatenate %12, %13, %14, %15, %16, %17, %18, %19 in 1 : vector<1x64xf32>, vector<1x64xf32>, vector<1x64xf32>, vector<1x64xf32>, vector<1x64xf32>, vector<1x64xf32>, vector<1x64xf32>, vector<1x64xf32> -> vector<1x512xf32>
    %21 = vector.extract_strided_slice %10 {offsets = [0, 64], sizes = [8, 64], strides = [1, 1]} : vector<8x128xf32> to vector<8x64xf32>
    %22 = vector.extract_strided_slice %21 {offsets = [0, 0], sizes = [1, 64], strides = [1, 1]} : vector<8x64xf32> to vector<1x64xf32>
    %23 = vector.extract_strided_slice %21 {offsets = [1, 0], sizes = [1, 64], strides = [1, 1]} : vector<8x64xf32> to vector<1x64xf32>
    %24 = vector.extract_strided_slice %21 {offsets = [2, 0], sizes = [1, 64], strides = [1, 1]} : vector<8x64xf32> to vector<1x64xf32>
    %25 = vector.extract_strided_slice %21 {offsets = [3, 0], sizes = [1, 64], strides = [1, 1]} : vector<8x64xf32> to vector<1x64xf32>
    %26 = vector.extract_strided_slice %21 {offsets = [4, 0], sizes = [1, 64], strides = [1, 1]} : vector<8x64xf32> to vector<1x64xf32>
    %27 = vector.extract_strided_slice %21 {offsets = [5, 0], sizes = [1, 64], strides = [1, 1]} : vector<8x64xf32> to vector<1x64xf32>
    %28 = vector.extract_strided_slice %21 {offsets = [6, 0], sizes = [1, 64], strides = [1, 1]} : vector<8x64xf32> to vector<1x64xf32>
    %29 = vector.extract_strided_slice %21 {offsets = [7, 0], sizes = [1, 64], strides = [1, 1]} : vector<8x64xf32> to vector<1x64xf32>
    %30 = tpu.concatenate %22, %23, %24, %25, %26, %27, %28, %29 in 1 : vector<1x64xf32>, vector<1x64xf32>, vector<1x64xf32>, vector<1x64xf32>, vector<1x64xf32>, vector<1x64xf32>, vector<1x64xf32>, vector<1x64xf32> -> vector<1x512xf32>
    %31 = tpu.concatenate %20, %30 in 0 : vector<1x512xf32>, vector<1x512xf32> -> vector<2x512xf32>
    %32 = arith.truncf %31 : vector<2x512xf32> to vector<2x512xbf16>
    %c0_7 = arith.constant 0 : index
    %c0_8 = arith.constant 0 : index
    %33 = vector.load %arg4[%c0_7, %c0_8] : memref<512x512xbf16, #tpu.memory_space<vmem>>, vector<512x512xbf16>
    %cst_9 = arith.constant dense<0.000000e+00> : vector<2x512xf32>
    %34 = tpu.matmul %32, %33, %cst_9 {dimension_numbers = #tpu.dot_dimension_numbers<[1], [0], [0], [1], [0, 0, 1, 1], [], []>} : vector<2x512xbf16>, vector<512x512xbf16>, vector<2x512xf32> -> vector<2x512xf32>
    %c0_10 = arith.constant 0 : index
    %c0_11 = arith.constant 0 : index
    %35 = vector.load %arg5[%c0_10, %c0_11] : memref<1x512xf32, #tpu.memory_space<vmem>>, vector<1x512xf32>
    %36 = vector.broadcast %35 : vector<1x512xf32> to vector<2x512xf32>
    %37 = arith.addf %34, %36 : vector<2x512xf32>
    %38 = vector.extract_strided_slice %37 {offsets = [0, 0], sizes = [2, 256], strides = [1, 1]} : vector<2x512xf32> to vector<2x256xf32>
    %39 = vector.extract_strided_slice %37 {offsets = [0, 256], sizes = [2, 256], strides = [1, 1]} : vector<2x512xf32> to vector<2x256xf32>
    %cst_12 = arith.constant 5.000000e-01 : f32
    %40 = vector.broadcast %cst_12 : f32 to vector<2x256xf32>
    %41 = arith.mulf %39, %40 : vector<2x256xf32>
    %42 = math.exp %41 : vector<2x256xf32>
    %c0_13 = arith.constant 0 : index
    %c0_14 = arith.constant 0 : index
    %43 = vector.load %arg6[%c0_13, %c0_14] : memref<1x256xf32, #tpu.memory_space<vmem>>, vector<1x256xf32>
    %44 = vector.broadcast %43 : vector<1x256xf32> to vector<2x256xf32>
    %45 = arith.mulf %42, %44 : vector<2x256xf32>
    %46 = arith.addf %38, %45 : vector<2x256xf32>
    %47 = vector.extract_strided_slice %46 {offsets = [0, 0], sizes = [2, 200], strides = [1, 1]} : vector<2x256xf32> to vector<2x200xf32>
    %c0_15 = arith.constant 0 : index
    %c0_16 = arith.constant 0 : index
    %48 = vector.load %arg7[%c0_15, %c0_16] : memref<2x200xf32, #tpu.memory_space<vmem>>, vector<2x200xf32>
    tpu.vector_store %arg7[%c0_15, %c0_16], %47 {strides = array<i32>} : memref<2x200xf32, #tpu.memory_space<vmem>>, vector<2x200xf32>,
    return
  }
  func.func @transform_0(%arg0: i32) -> (i32, i32) {
    %c0_i32 = arith.constant 0 : i32
    %c0_i32_0 = arith.constant 0 : i32
    %c0_i32_1 = arith.constant 0 : i32
    return %c0_i32, %c0_i32_0 : i32, i32
  }
  func.func @transform_1(%arg0: i32) -> (i32, i32) {
    %c0_i32 = arith.constant 0 : i32
    %c0_i32_0 = arith.constant 0 : i32
    %c0_i32_1 = arith.constant 0 : i32
    return %c0_i32, %c0_i32_0 : i32, i32
  }
  func.func @transform_2(%arg0: i32) -> (i32, i32) {
    %c0_i32 = arith.constant 0 : i32
    %c0_i32_0 = arith.constant 0 : i32
    %c0_i32_1 = arith.constant 0 : i32
    return %c0_i32, %c0_i32_0 : i32, i32
  }
  func.func @transform_3(%arg0: i32) -> (i32, i32) {
    %c0_i32 = arith.constant 0 : i32
    %c0_i32_0 = arith.constant 0 : i32
    %c0_i32_1 = arith.constant 0 : i32
    return %c0_i32, %c0_i32_0 : i32, i32
  }
  func.func @transform_4(%arg0: i32) -> (i32, i32) {
    %c0_i32 = arith.constant 0 : i32
    %c0_i32_0 = arith.constant 0 : i32
    %c0_i32_1 = arith.constant 0 : i32
    return %c0_i32, %c0_i32_0 : i32, i32
  }
  func.func @transform_5(%arg0: i32) -> (i32, i32) {
    %c0_i32 = arith.constant 0 : i32
    %c0_i32_0 = arith.constant 0 : i32
    %c0_i32_1 = arith.constant 0 : i32
    return %c0_i32, %c0_i32_0 : i32, i32
  }
  func.func @transform_6(%arg0: i32) -> (i32, i32) {
    %c0_i32 = arith.constant 0 : i32
    %c0_i32_0 = arith.constant 0 : i32
    %c0_i32_1 = arith.constant 0 : i32
    return %c0_i32, %c0_i32_0 : i32, i32
  }
}

</mosaic_0001>

<bundles_post_ra>
// kernel: encoder_forward.2
= control target key start
LH: loop header
LB: loop body
LE: loop exit
PB: predicated region body
PF: predicated region fallthrough
CT: control target
= control target key end

     0   :  { %s2124_s0 = inlined_call_operand.vmem [shape: bf16[8,32], index: 0, kind: input, shape index: {}]   ;;  %s2125_s1 = inlined_call_operand.vmem [shape: f32[8,1], index: 1, kind: input, shape index: {}]   ;;  %s2126_s2 = inlined_call_operand.vmem [shape: bf16[512,512], index: 2, kind: input, shape index: {}]   ;;  %s2127_s3 = inlined_call_operand.vmem [shape: f32[1,512], index: 3, kind: input, shape index: {}]   ;;  %s2128_s4 = inlined_call_operand.vmem [shape: f32[1,256], index: 4, kind: input, shape index: {}]   ;;  %s2129_s5 = inlined_call_operand.vmem [shape: bf16[27,128], index: 5, kind: input, shape index: {}]   ;;  %s2130_s6 = inlined_call_operand.<no memory space> [shape: bf16[], index: 6, kind: input, shape index: {}]   ;;  %s2131_s7 = inlined_call_operand.hbm [shape: f32[2,200], index: 7, kind: output, shape index: {}]  }
   0x1   :  { %v12_v0 = vstv %s2130_s6 }
   0x2   :  { %v13_v1 = vunpack.i.l.bf16 %v12_v0 }
   0x3   :  { %v1236_v2 = vld [vmem:[%s2129_s5 + $0xc] sm:$0xf]  ;;  %v80_v3 = vlaneseq  ;;  %v30_v4 = vld [vmem:[%s2129_s5] sm:$0xff]   ;;  %v1235_v5 = vld [vmem:[%s2129_s5 + $0x8] sm:$0xf]  ;;  %v1634_v6 = vmov 0.0  }
   0x4   :  { %1371 = vmatprep.subr.bf16.mxu0 %v1634_v6  ;;  %40 = vst [vmem:[#allocation9] sm:$0xff] %v30_v4   ;;  %66 = vst [vmem:[#allocation9 + $0x8] sm:$0xf] %v1235_v5  ;;  %v95_v7 = vld [vmem:[%s2125_s1] sm:$0xff]  ;;  %vm1635_vm0 = vmmov 0   ;;  %v1636_v9 = vmov 0   ;;  %v78_v10 = vunpack.c.l.bf16 %v1236_v2 }
   0x5   :  { %v1695_v8 = vshrl.u32 %v80_v3, 7  ;;  %1375 = vmatprep.mubr.msk.bf16.mxu0 %vm1635_vm0, %v1634_v6  ;;  %1391 = vset.pattern.permute.xlu0 %v1636_v9  ;;  %v90_v16 = vld [vmem:[%s2124_s0] sm:$0xf]  ;;  %vm113_vm2 = vcmask 261120  }
   0x6   :  { %98 = vperm.xlu0 %1391, %v95_v7  }
   0x7   :  { %v82_v11 = vadd.s32 24, %v1695_v8 }
   0x9   :  { %vm83_vm1 = vcmp.lt.s32.totalorder %v82_v11, 27 }
   0xa   :  { %v84_v12 = vsel %vm83_vm1, %v78_v10, %v13_v1 }
   0xb   :  { %v86_v13 = vpack.c.bf16 %v1634_v6, %v84_v12  ;;  %v1412_v14 = vld [vmem:[#allocation9] sm:$0xff]  }
   0xc   :  { %1372 = vmatpush3.bf16.msra.mxu0 %v1412_v14 }
   0xd   :  { %88 = vst [vmem:[#allocation9 + $0xc] sm:$0xf] %v86_v13  ;;  %1373 = vmatprep.subr.bf16.mxu0 %v1634_v6 }
  0x14   :  { %v1413_v15 = vld [vmem:[#allocation9 + $0x8] sm:$0xff]  }
  0x15   :  { %1374 = vmatpush3.bf16.msra.mxu0 %v1413_v15 }
  0x18   :  { %1376 = vmatmul.mubr.msk.bf16.vlgmr.msra.gmra.mrb[0].mxu0 %vm113_vm2, %v90_v16 }
  0x19   :  { %17 = vsyncpa [#allocation8], 0  ;;  %v1414_v17 = vld [vmem:[%s2126_s2] ss:$16 sps:$4 sm:$0xff]   ;;  %v1416_v18 = vld [vmem:[%s2126_s2 + $0x4] ss:$16 sps:$4 sm:$0xff]  }
  0x1a   :  { %v1417_v19 = vld [vmem:[%s2126_s2 + $0xc] ss:$16 sps:$4 sm:$0xff]   ;;  %v1419_v20 = vld [vmem:[%s2126_s2 + $0x8] ss:$16 sps:$4 sm:$0xff]   ;;  %v1422_v21 = vld [vmem:[%s2126_s2 + $0x24] ss:$16 sps:$4 sm:$0xff]   ;;  %1019 = vmatprep.subr.bf16.mxu0 %v1416_v18 }
  0x1b   :  { %1101 = vmatprep.subr.bf16.mxu1 %v1417_v19  ;;  %v1423_v22 = vld [vmem:[%s2126_s2 + $0x2c] ss:$16 sps:$4 sm:$0xff]   ;;  %1020 = vmatpush1.bf16.msra.mxu0 %v1414_v17  ;;  %v1420_v23 = vld [vmem:[%s2126_s2 + $0x20] ss:$16 sps:$4 sm:$0xff]   ;;  %v1425_v24 = vld [vmem:[%s2126_s2 + $0x28] ss:$16 sps:$4 sm:$0xff]  }
  0x1c   :  { %1102 = vmatpush1.bf16.msra.mxu1 %v1419_v20  ;;  %1021 = vmatprep.subr.bf16.mxu0 %v1422_v21  ;;  %v1428_v25 = vld [vmem:[%s2126_s2 + $0x44] ss:$16 sps:$4 sm:$0xff]   ;;  %v1429_v26 = vld [vmem:[%s2126_s2 + $0x4c] ss:$16 sps:$4 sm:$0xff]   ;;  %v1426_v27 = vld [vmem:[%s2126_s2 + $0x40] ss:$16 sps:$4 sm:$0xff]  }
  0x1d   :  { %1103 = vmatprep.subr.bf16.mxu1 %v1423_v22  ;;  %v1431_v28 = vld [vmem:[%s2126_s2 + $0x48] ss:$16 sps:$4 sm:$0xff]   ;;  %v1434_v29 = vld [vmem:[%s2126_s2 + $0x64] ss:$16 sps:$4 sm:$0xff]   ;;  %v1435_v30 = vld [vmem:[%s2126_s2 + $0x6c] ss:$16 sps:$4 sm:$0xff]  }
  0x1e   :  { %v1432_v31 = vld [vmem:[%s2126_s2 + $0x60] ss:$16 sps:$4 sm:$0xff]   ;;  %v1437_v32 = vld [vmem:[%s2126_s2 + $0x68] ss:$16 sps:$4 sm:$0xff]   ;;  %v1440_v33 = vld [vmem:[%s2126_s2 + $0x84] ss:$16 sps:$4 sm:$0xff]  }
  0x1f   :  { %1022 = vmatpush1.bf16.msra.mxu0 %v1420_v23  ;;  %v1441_v34 = vld [vmem:[%s2126_s2 + $0x8c] ss:$16 sps:$4 sm:$0xff]   ;;  %v1438_v35 = vld [vmem:[%s2126_s2 + $0x80] ss:$16 sps:$4 sm:$0xff]   ;;  %v1443_v36 = vld [vmem:[%s2126_s2 + $0x88] ss:$16 sps:$4 sm:$0xff]  }
  0x20   :  { %1104 = vmatpush1.bf16.msra.mxu1 %v1425_v24  ;;  %1023 = vmatprep.subr.bf16.mxu0 %v1428_v25  ;;  %v1446_v37 = vld [vmem:[%s2126_s2 + $0xa4] ss:$16 sps:$4 sm:$0xff]   ;;  %v1447_v38 = vld [vmem:[%s2126_s2 + $0xac] ss:$16 sps:$4 sm:$0xff]   ;;  %v1444_v39 = vld [vmem:[%s2126_s2 + $0xa0] ss:$16 sps:$4 sm:$0xff]  }
  0x21   :  { %1105 = vmatprep.subr.bf16.mxu1 %v1429_v26  ;;  %v1449_v40 = vld [vmem:[%s2126_s2 + $0xa8] ss:$16 sps:$4 sm:$0xff]   ;;  %v1452_v41 = vld [vmem:[%s2126_s2 + $0xc4] ss:$16 sps:$4 sm:$0xff]   ;;  %v1453_v42 = vld [vmem:[%s2126_s2 + $0xcc] ss:$16 sps:$4 sm:$0xff]  }
  0x22   :  { %v1450_v43 = vld [vmem:[%s2126_s2 + $0xc0] ss:$16 sps:$4 sm:$0xff]   ;;  %v1455_v44 = vld [vmem:[%s2126_s2 + $0xc8] ss:$16 sps:$4 sm:$0xff]   ;;  %v1458_v45 = vld [vmem:[%s2126_s2 + $0xe4] ss:$16 sps:$4 sm:$0xff]  }
  0x23   :  { %1024 = vmatpush1.bf16.msra.mxu0 %v1426_v27  ;;  %v1459_v46 = vld [vmem:[%s2126_s2 + $0xec] ss:$16 sps:$4 sm:$0xff]   ;;  %v1456_v47 = vld [vmem:[%s2126_s2 + $0xe0] ss:$16 sps:$4 sm:$0xff]   ;;  %v1461_v48 = vld [vmem:[%s2126_s2 + $0xe8] ss:$16 sps:$4 sm:$0xff]  }
  0x24   :  { %1106 = vmatpush1.bf16.msra.mxu1 %v1431_v28  ;;  %1025 = vmatprep.subr.bf16.mxu0 %v1434_v29  ;;  %v1464_v49 = vld [vmem:[%s2126_s2 + $0x104] ss:$16 sps:$4 sm:$0xff]   ;;  %v1465_v50 = vld [vmem:[%s2126_s2 + $0x10c] ss:$16 sps:$4 sm:$0xff]   ;;  %v1462_v51 = vld [vmem:[%s2126_s2 + $0x100] ss:$16 sps:$4 sm:$0xff]  }
  0x25   :  { %1107 = vmatprep.subr.bf16.mxu1 %v1435_v30  ;;  %v1467_v52 = vld [vmem:[%s2126_s2 + $0x108] ss:$16 sps:$4 sm:$0xff]   ;;  %v1470_v53 = vld [vmem:[%s2126_s2 + $0x124] ss:$16 sps:$4 sm:$0xff]   ;;  %v1471_v54 = vld [vmem:[%s2126_s2 + $0x12c] ss:$16 sps:$4 sm:$0xff]  }
  0x26   :  { %v1468_v55 = vld [vmem:[%s2126_s2 + $0x120] ss:$16 sps:$4 sm:$0xff]   ;;  %v1473_v56 = vld [vmem:[%s2126_s2 + $0x128] ss:$16 sps:$4 sm:$0xff]   ;;  %v1476_v57 = vld [vmem:[%s2126_s2 + $0x144] ss:$16 sps:$4 sm:$0xff]  }
  0x27   :  { %1026 = vmatpush1.bf16.msra.mxu0 %v1432_v31  ;;  %v1477_v58 = vld [vmem:[%s2126_s2 + $0x14c] ss:$16 sps:$4 sm:$0xff]   ;;  %v1474_v59 = vld [vmem:[%s2126_s2 + $0x140] ss:$16 sps:$4 sm:$0xff]   ;;  %v1479_v60 = vld [vmem:[%s2126_s2 + $0x148] ss:$16 sps:$4 sm:$0xff]  }
  0x28   :  { %1108 = vmatpush1.bf16.msra.mxu1 %v1437_v32  ;;  %1027 = vmatprep.subr.bf16.mxu0 %v1440_v33  ;;  %v1482_v61 = vld [vmem:[%s2126_s2 + $0x164] ss:$16 sps:$4 sm:$0xff]   ;;  %v1483_v62 = vld [vmem:[%s2126_s2 + $0x16c] ss:$16 sps:$4 sm:$0xff]   ;;  %v1480_v63 = vld [vmem:[%s2126_s2 + $0x160] ss:$16 sps:$4 sm:$0xff]  }
  0x29   :  { %1109 = vmatprep.subr.bf16.mxu1 %v1441_v34  ;;  %v1485_v0 = vld [vmem:[%s2126_s2 + $0x168] ss:$16 sps:$4 sm:$0xff]   ;;  %v1488_v1 = vld [vmem:[%s2126_s2 + $0x184] ss:$16 sps:$4 sm:$0xff]   ;;  %v1489_v2 = vld [vmem:[%s2126_s2 + $0x18c] ss:$16 sps:$4 sm:$0xff]  }
  0x2a   :  { %v1486_v3 = vld [vmem:[%s2126_s2 + $0x180] ss:$16 sps:$4 sm:$0xff]   ;;  %v1491_v4 = vld [vmem:[%s2126_s2 + $0x188] ss:$16 sps:$4 sm:$0xff]   ;;  %v1494_v5 = vld [vmem:[%s2126_s2 + $0x1a4] ss:$16 sps:$4 sm:$0xff]  }
  0x2b   :  { %1028 = vmatpush1.bf16.msra.mxu0 %v1438_v35  ;;  %v1495_v6 = vld [vmem:[%s2126_s2 + $0x1ac] ss:$16 sps:$4 sm:$0xff]   ;;  %v1492_v7 = vld [vmem:[%s2126_s2 + $0x1a0] ss:$16 sps:$4 sm:$0xff]   ;;  %v1497_v9 = vld [vmem:[%s2126_s2 + $0x1a8] ss:$16 sps:$4 sm:$0xff]  }
  0x2c   :  { %1110 = vmatpush1.bf16.msra.mxu1 %v1443_v36  ;;  %1029 = vmatprep.subr.bf16.mxu0 %v1446_v37  ;;  %v1500_v10 = vld [vmem:[%s2126_s2 + $0x1c4] ss:$16 sps:$4 sm:$0xff]   ;;  %v1501_v11 = vld [vmem:[%s2126_s2 + $0x1cc] ss:$16 sps:$4 sm:$0xff]   ;;  %v1498_v12 = vld [vmem:[%s2126_s2 + $0x1c0] ss:$16 sps:$4 sm:$0xff]  }
  0x2d   :  { %1111 = vmatprep.subr.bf16.mxu1 %v1447_v38  ;;  %v1503_v13 = vld [vmem:[%s2126_s2 + $0x1c8] ss:$16 sps:$4 sm:$0xff]   ;;  %v1506_v16 = vld [vmem:[%s2126_s2 + $0x1e4] ss:$16 sps:$4 sm:$0xff]   ;;  %v1507_v17 = vld [vmem:[%s2126_s2 + $0x1ec] ss:$16 sps:$4 sm:$0xff]  }
  0x2e   :  { %v1504_v20 = vld [vmem:[%s2126_s2 + $0x1e0] ss:$16 sps:$4 sm:$0xff]   ;;  %v1509_v21 = vld [vmem:[%s2126_s2 + $0x1e8] ss:$16 sps:$4 sm:$0xff]   ;;  %v1512_v25 = vld [vmem:[%s2126_s2 + $0x204] ss:$16 sps:$4 sm:$0xff]  }
  0x2f   :  { %1030 = vmatpush1.bf16.msra.mxu0 %v1444_v39  ;;  %v1515_v26 = vld [vmem:[%s2126_s2 + $0x20c] ss:$16 sps:$4 sm:$0xff]   ;;  %s1637_s6 = smov 64   ;;  %vm183_vm4 = vcmask 523264   ;;  %vm220_vm5 = vcmask 1040384   ;;  %vm1216_vm6 = vcmask 1041408  }
  0x30   :  { %1112 = vmatpush1.bf16.msra.mxu1 %v1449_v40  ;;  %1031 = vmatprep.subr.bf16.mxu0 %v1452_v41  ;;  %vm1217_vm7 = vcmask 584706   ;;  %s1639_s25 = smov [#allocation7]  }
  0x31   :  { %1113 = vmatprep.subr.bf16.mxu1 %v1453_v42  ;;  %s1226_s26 = sshll.u32 %s1639_s25, 4  ;;  %vm1218_vm8 = vmor %vm1217_vm7, %vm1216_vm6  ;;  %s1227_s26 = int_to_ptr.vmem [resolvable:$true] %s1226_s26 }
  0x32   :  { %p1615_p1 = scmp.lt.s32.totalorder %s1227_s26, %s1227_s26 }
  0x33   :  { %1032 = vmatpush1.bf16.msra.mxu0 %v1450_v43 }
  0x34   :  { %1114 = vmatpush1.bf16.msra.mxu1 %v1455_v44  ;;  %1033 = vmatprep.subr.bf16.mxu0 %v1458_v45 }
  0x35   :  { %1115 = vmatprep.subr.bf16.mxu1 %v1459_v46 }
  0x37   :  { %1034 = vmatpush1.bf16.msra.mxu0 %v1456_v47 }
  0x38   :  { %1116 = vmatpush1.bf16.msra.mxu1 %v1461_v48  ;;  %1035 = vmatprep.subr.bf16.mxu0 %v1464_v49 }
  0x39   :  { %1117 = vmatprep.subr.bf16.mxu1 %v1465_v50 }
  0x3b   :  { %1036 = vmatpush1.bf16.msra.mxu0 %v1462_v51 }
  0x3c   :  { %1118 = vmatpush1.bf16.msra.mxu1 %v1467_v52  ;;  %1037 = vmatprep.subr.bf16.mxu0 %v1470_v53 }
  0x3d   :  { %1119 = vmatprep.subr.bf16.mxu1 %v1471_v54 }
  0x3f   :  { %1038 = vmatpush1.bf16.msra.mxu0 %v1468_v55 }
  0x40   :  { %1120 = vmatpush1.bf16.msra.mxu1 %v1473_v56  ;;  %1039 = vmatprep.subr.bf16.mxu0 %v1476_v57 }
  0x41   :  { %1121 = vmatprep.subr.bf16.mxu1 %v1477_v58 }
  0x43   :  { %1040 = vmatpush1.bf16.msra.mxu0 %v1474_v59 }
  0x44   :  { %1122 = vmatpush1.bf16.msra.mxu1 %v1479_v60  ;;  %1041 = vmatprep.subr.bf16.mxu0 %v1482_v61 }
  0x45   :  { %1123 = vmatprep.subr.bf16.mxu1 %v1483_v62 }
  0x47   :  { %1042 = vmatpush1.bf16.msra.mxu0 %v1480_v63 }
  0x48   :  { %1124 = vmatpush1.bf16.msra.mxu1 %v1485_v0  ;;  %1043 = vmatprep.subr.bf16.mxu0 %v1488_v1  ;;  %v1510_v0 = vld [vmem:[%s2126_s2 + $0x200] ss:$16 sps:$4 sm:$0xff]   ;;  %v1513_v1 = vld [vmem:[%s2126_s2 + $0x208] ss:$16 sps:$4 sm:$0xff]  }
  0x49   :  { %1125 = vmatprep.subr.bf16.mxu1 %v1489_v2 }
  0x4b   :  { %1044 = vmatpush1.bf16.msra.mxu0 %v1486_v3 }
  0x4c   :  { %1126 = vmatpush1.bf16.msra.mxu1 %v1491_v4  ;;  %1045 = vmatprep.subr.bf16.mxu0 %v1494_v5  ;;  %v1518_v5 = vld [vmem:[%s2126_s2 + $0x224] ss:$16 sps:$4 sm:$0xff]  }
  0x4d   :  { %1127 = vmatprep.subr.bf16.mxu1 %v1495_v6 }
  0x4f   :  { %1046 = vmatpush1.bf16.msra.mxu0 %v1492_v7  ;;  %v1521_v7 = vld [vmem:[%s2126_s2 + $0x22c] ss:$16 sps:$4 sm:$0xff]  }
  0x50   :  { %1128 = vmatpush1.bf16.msra.mxu1 %v1497_v9  ;;  %1047 = vmatprep.subr.bf16.mxu0 %v1500_v10 }
  0x51   :  { %1129 = vmatprep.subr.bf16.mxu1 %v1501_v11  ;;  %v1516_v11 = vld [vmem:[%s2126_s2 + $0x220] ss:$16 sps:$4 sm:$0xff]  }
  0x53   :  { %1048 = vmatpush1.bf16.msra.mxu0 %v1498_v12  ;;  %v1519_v12 = vld [vmem:[%s2126_s2 + $0x228] ss:$16 sps:$4 sm:$0xff]  }
  0x54   :  { %1130 = vmatpush1.bf16.msra.mxu1 %v1503_v13  ;;  %1049 = vmatprep.subr.bf16.mxu0 %v1506_v16  ;;  %v1524_v13 = vld [vmem:[%s2126_s2 + $0x244] ss:$16 sps:$4 sm:$0xff]   ;;  %v1525_v16 = vld [vmem:[%s2126_s2 + $0x248] ss:$16 sps:$4 sm:$0xff]  }
  0x55   :  { %1131 = vmatprep.subr.bf16.mxu1 %v1507_v17  ;;  %v1530_v17 = vld [vmem:[%s2126_s2 + $0x264] ss:$16 sps:$4 sm:$0xff]  }
  0x57   :  { %1050 = vmatpush1.bf16.msra.mxu0 %v1504_v20  ;;  %v1531_v20 = vld [vmem:[%s2126_s2 + $0x268] ss:$16 sps:$4 sm:$0xff]  }
  0x58   :  { %1132 = vmatpush1.bf16.msra.mxu1 %v1509_v21  ;;  %1060 = vmatprep.subr.bf16.mxu0 %v1512_v25  ;;  %v1536_v21 = vld [vmem:[%s2126_s2 + $0x284] ss:$16 sps:$4 sm:$0xff]  }
  0x59   :  { %1142 = vmatprep.subr.bf16.mxu1 %v1515_v26  ;;  %v1542_v25 = vld [vmem:[%s2126_s2 + $0x2a4] ss:$16 sps:$4 sm:$0xff]   ;;  %v1545_v26 = vld [vmem:[%s2126_s2 + $0x2ac] ss:$16 sps:$4 sm:$0xff]  }
  0x85   :  { %v99_v14 = vpop.permute.xlu0 %98 }
  0xeb   :  { %v151_v15 = vpop.f32.mrb[0].mxu0 }
  0xec   :  { %v152_v18 = vadd.f32 %v151_v15, %v99_v14  ;;  %v1377_v19 = vpop.f32.mrb[1].mxu0  ;;  %v1527_v14 = vld [vmem:[%s2126_s2 + $0x24c] ss:$16 sps:$4 sm:$0xff]   ;;  %v1522_v15 = vld [vmem:[%s2126_s2 + $0x240] ss:$16 sps:$4 sm:$0xff]  }
  0xed   :  { %v154_v22 = vpop.f32.mrb[2].mxu0  ;;  %v1528_v19 = vld [vmem:[%s2126_s2 + $0x260] ss:$16 sps:$4 sm:$0xff]  }
  0xee   :  { %vm157_vm3 = vcmp.ge.f32.partialorder %v152_v18, 0.0  ;;  %v158_v23 = vmul.f32 0.01, %v152_v18  ;;  %v1378_v24 = vpop.f32.mrb[3].mxu0  ;;  %v1539_v22 = vld [vmem:[%s2126_s2 + $0x28c] ss:$16 sps:$4 sm:$0xff]  }
  0xef   :  { %v1537_v24 = vld [vmem:[%s2126_s2 + $0x288] ss:$16 sps:$4 sm:$0xff]  }
  0xf0   :  { %v159_v27 = vsel %vm157_vm3, %v152_v18, %v158_v23  ;;  %v1533_v18 = vld [vmem:[%s2126_s2 + $0x26c] ss:$16 sps:$4 sm:$0xff]   ;;  %v1534_v23 = vld [vmem:[%s2126_s2 + $0x280] ss:$16 sps:$4 sm:$0xff]  }
  0xf1   :  { %v165_v28 = vrot.slane %v159_v27, 2  ;;  %v161_v29 = vrot.slane %v159_v27, 1  ;;  %v167_v30 = vrot.slane %v159_v27, 3  ;;  %v173_v31 = vrot.slane %v159_v27, 5 }
  0xf2   :  { %v179_v32 = vrot.slane %v159_v27, 7  ;;  %v171_v35 = vrot.slane %v159_v27, 4  ;;  %v177_v36 = vrot.slane %v159_v27, 6 }
  0xf3   :  { %v1392_v33 = vpack.i.bf16 %v159_v27, %v165_v28  ;;  %v1397_v34 = vpack.i.bf16 %v161_v29, %v167_v30 }
  0xf4   :  { %v1407_v37 = vpack.i.bf16 %v173_v31, %v179_v32  ;;  %v1402_v38 = vpack.i.bf16 %v171_v35, %v177_v36 }
  0xf5   :  { %1393 = vrot.lane.b32.xlu0 %v1392_v33, %s1637_s6  ;;  %1398 = vrot.lane.b32.xlu1 %v1397_v34, %s1637_s6  ;;  %v1554_v33 = vld [vmem:[%s2126_s2 + $0x2e4] ss:$16 sps:$4 sm:$0xff]   ;;  %v1557_v34 = vld [vmem:[%s2126_s2 + $0x2ec] ss:$16 sps:$4 sm:$0xff]  }
  0xf9   :  { %1408 = vrot.lane.b32.xlu0 %v1407_v37, %s1637_s6  ;;  %1403 = vrot.lane.b32.xlu1 %v1402_v38, %s1637_s6  ;;  %v1560_v37 = vld [vmem:[%s2126_s2 + $0x304] ss:$16 sps:$4 sm:$0xff]   ;;  %v1563_v38 = vld [vmem:[%s2126_s2 + $0x30c] ss:$16 sps:$4 sm:$0xff]  }
 0x167   :  { %v1394_v39 = vpop.permute.xlu0 %1393  ;;  %v1399_v40 = vpop.permute.xlu1 %1398 }
 0x168   :  { %v1396_v41 = vunpack.i.h.bf16 %v1394_v39  ;;  %v1395_v42 = vunpack.i.l.bf16 %v1394_v39  ;;  %v1401_v43 = vunpack.i.h.bf16 %v1399_v40  ;;  %v1400_v44 = vunpack.i.l.bf16 %v1399_v40  ;;  %v1558_v39 = vld [vmem:[%s2126_s2 + $0x300] ss:$16 sps:$4 sm:$0xff]   ;;  %v1561_v40 = vld [vmem:[%s2126_s2 + $0x308] ss:$16 sps:$4 sm:$0xff]  }
 0x16a   :  { %v204_v45 = vsel %vm183_vm4, %v1396_v41, %v161_v29  ;;  %v205_v46 = vsel %vm183_vm4, %v1395_v42, %v167_v30  ;;  %v184_v49 = vsel %vm183_vm4, %v159_v27, %v1401_v43  ;;  %v185_v50 = vsel %vm183_vm4, %v165_v28, %v1400_v44  ;;  %v1540_v27 = vld [vmem:[%s2126_s2 + $0x2a0] ss:$16 sps:$4 sm:$0xff]   ;;  %v1543_v28 = vld [vmem:[%s2126_s2 + $0x2a8] ss:$16 sps:$4 sm:$0xff]   ;;  %v1548_v29 = vld [vmem:[%s2126_s2 + $0x2c4] ss:$16 sps:$4 sm:$0xff]  }
 0x16b   :  { %v212_v47 = vrot.slane %v204_v45, 7  ;;  %v213_v48 = vrot.slane %v205_v46, 7  ;;  %v1409_v51 = vpop.permute.xlu0 %1408  ;;  %v1404_v52 = vpop.permute.xlu1 %1403  ;;  %v1551_v30 = vld [vmem:[%s2126_s2 + $0x2cc] ss:$16 sps:$4 sm:$0xff]   ;;  %v1566_v41 = vld [vmem:[%s2126_s2 + $0x324] ss:$16 sps:$4 sm:$0xff]  }
 0x16c   :  { %v1411_v53 = vunpack.i.h.bf16 %v1409_v51  ;;  %v1410_v54 = vunpack.i.l.bf16 %v1409_v51  ;;  %v1406_v55 = vunpack.i.h.bf16 %v1404_v52  ;;  %v1405_v56 = vunpack.i.l.bf16 %v1404_v52  ;;  %v1569_v42 = vld [vmem:[%s2126_s2 + $0x32c] ss:$16 sps:$4 sm:$0xff]   ;;  %v1564_v43 = vld [vmem:[%s2126_s2 + $0x320] ss:$16 sps:$4 sm:$0xff]   ;;  %v1567_v44 = vld [vmem:[%s2126_s2 + $0x328] ss:$16 sps:$4 sm:$0xff]  }
 0x16d   :  { %v222_v57 = vsel %vm220_vm5, %v185_v50, %v213_v48  ;;  %v221_v58 = vsel %vm220_vm5, %v184_v49, %v212_v47  ;;  %v1572_v45 = vld [vmem:[%s2126_s2 + $0x344] ss:$16 sps:$4 sm:$0xff]   ;;  %v1575_v46 = vld [vmem:[%s2126_s2 + $0x34c] ss:$16 sps:$4 sm:$0xff]   ;;  %v1570_v47 = vld [vmem:[%s2126_s2 + $0x340] ss:$16 sps:$4 sm:$0xff]  }
 0x16e   :  { %v206_v59 = vsel %vm183_vm4, %v1406_v55, %v173_v31  ;;  %v207_v60 = vsel %vm183_vm4, %v1405_v56, %v179_v32  ;;  %v226_v63 = vpack.c.bf16 %v222_v57, %v222_v57  ;;  %v225_v2 = vpack.c.bf16 %v221_v58, %v221_v58  ;;  %v1546_v31 = vld [vmem:[%s2126_s2 + $0x2c0] ss:$16 sps:$4 sm:$0xff]   ;;  %v1549_v32 = vld [vmem:[%s2126_s2 + $0x2c8] ss:$16 sps:$4 sm:$0xff]   ;;  %v1578_v49 = vld [vmem:[%s2126_s2 + $0x364] ss:$16 sps:$4 sm:$0xff]  }
 0x16f   :  { %v214_v61 = vrot.slane %v206_v59, 7  ;;  %v215_v62 = vrot.slane %v207_v60, 7  ;;  %v186_v3 = vsel %vm183_vm4, %v171_v35, %v1411_v53  ;;  %v187_v4 = vsel %vm183_vm4, %v177_v36, %v1410_v54  ;;  %v1552_v35 = vld [vmem:[%s2126_s2 + $0x2e0] ss:$16 sps:$4 sm:$0xff]   ;;  %v1555_v36 = vld [vmem:[%s2126_s2 + $0x2e8] ss:$16 sps:$4 sm:$0xff]  }
 0x170   :  { %1051 = vmatprep.mubr.bf16.mxu0 %v226_v63  ;;  %1133 = vmatprep.mubr.bf16.mxu1 %v226_v63  ;;  %v1573_v48 = vld [vmem:[%s2126_s2 + $0x348] ss:$16 sps:$4 sm:$0xff]   ;;  %v1581_v50 = vld [vmem:[%s2126_s2 + $0x36c] ss:$16 sps:$4 sm:$0xff]   ;;  %v1576_v51 = vld [vmem:[%s2126_s2 + $0x360] ss:$16 sps:$4 sm:$0xff]  }
 0x171   :  { %v224_v6 = vsel %vm220_vm5, %v187_v4, %v215_v62  ;;  %v1923_v9 = vsel %vm220_vm5, %v186_v3, %v214_v61  ;;  %1052 = vmatmul.mubr.bf16.vlgmr.msra.gmra.mrb[4].mxu0 %v225_v2  ;;  %1134 = vmatmul.mubr.bf16.vlgmr.msra.gmra.mrb[0].mxu1 %v225_v2  ;;  %v1579_v52 = vld [vmem:[%s2126_s2 + $0x368] ss:$16 sps:$4 sm:$0xff]   ;;  %v1584_v53 = vld [vmem:[%s2126_s2 + $0x384] ss:$16 sps:$4 sm:$0xff]   ;;  %v1587_v54 = vld [vmem:[%s2126_s2 + $0x38c] ss:$16 sps:$4 sm:$0xff]  }
 0x172   :  { %v228_v10 = vpack.c.bf16 %v224_v6, %v224_v6  ;;  %1061 = vmatpush1.bf16.msra.mxu0 %v1510_v0  ;;  %1143 = vmatpush1.bf16.msra.mxu1 %v1513_v1  ;;  %v1582_v55 = vld [vmem:[%s2126_s2 + $0x380] ss:$16 sps:$4 sm:$0xff]   ;;  %v1585_v56 = vld [vmem:[%s2126_s2 + $0x388] ss:$16 sps:$4 sm:$0xff]   ;;  %v1590_v57 = vld [vmem:[%s2126_s2 + $0x3a4] ss:$16 sps:$4 sm:$0xff]  }
 0x173   :  { %1062 = vmatprep.subr.bf16.mxu0 %v1518_v5  ;;  %1144 = vmatprep.subr.bf16.mxu1 %v1521_v7  ;;  %v1593_v58 = vld [vmem:[%s2126_s2 + $0x3ac] ss:$16 sps:$4 sm:$0xff]   ;;  %v1588_v59 = vld [vmem:[%s2126_s2 + $0x3a0] ss:$16 sps:$4 sm:$0xff]   ;;  %v1591_v60 = vld [vmem:[%s2126_s2 + $0x3a8] ss:$16 sps:$4 sm:$0xff]   ;;  %v227_v5 = vpack.c.bf16 %v1923_v9, %v1923_v9 }
 0x174   :  { %1092 = vmatprep.mubr.bf16.mxu0 %v228_v10  ;;  %1174 = vmatprep.mubr.bf16.mxu1 %v228_v10  ;;  %v1596_v61 = vld [vmem:[%s2126_s2 + $0x3c4] ss:$16 sps:$4 sm:$0xff]   ;;  %v1599_v62 = vld [vmem:[%s2126_s2 + $0x3cc] ss:$16 sps:$4 sm:$0xff]   ;;  %v1594_v63 = vld [vmem:[%s2126_s2 + $0x3c0] ss:$16 sps:$4 sm:$0xff]  }
 0x175   :  { %v1597_v0 = vld [vmem:[%s2126_s2 + $0x3c8] ss:$16 sps:$4 sm:$0xff]   ;;  %v1602_v1 = vld [vmem:[%s2126_s2 + $0x3e4] ss:$16 sps:$4 sm:$0xff]   ;;  %v1605_v2 = vld [vmem:[%s2126_s2 + $0x3ec] ss:$16 sps:$4 sm:$0xff]  }
 0x176   :  { %1063 = vmatpush1.bf16.msra.mxu0 %v1516_v11  ;;  %1145 = vmatpush1.bf16.msra.mxu1 %v1519_v12  ;;  %v1600_v3 = vld [vmem:[%s2126_s2 + $0x3e0] ss:$16 sps:$4 sm:$0xff]   ;;  %v1603_v4 = vld [vmem:[%s2126_s2 + $0x3e8] ss:$16 sps:$4 sm:$0xff]   ;;  %v361_v12 = vsub.s32 0, %v1695_v8 }
 0x177   :  { %1064 = vmatprep.subr.bf16.mxu0 %v1524_v13  ;;  %1146 = vmatprep.subr.bf16.mxu1 %v1527_v14  ;;  %v357_v13 = vld [vmem:[%s2127_s3] sm:$0xf]  ;;  %v365_v14 = vsub.s32 1, %v1695_v8 }
 0x179   :  { %v366_v9 = vrot.slane %v357_v13, %v365_v14 }
 0x17a   :  { %1065 = vmatpush1.bf16.msra.mxu0 %v1522_v15  ;;  %1147 = vmatpush1.bf16.msra.mxu1 %v1525_v16  ;;  %v369_v15 = vsub.s32 2, %v1695_v8  ;;  %v373_v16 = vsub.s32 3, %v1695_v8 }
 0x17b   :  { %1066 = vmatprep.subr.bf16.mxu0 %v1530_v17  ;;  %1148 = vmatprep.subr.bf16.mxu1 %v1533_v18  ;;  %v362_v17 = vrot.slane %v357_v13, %v361_v12 }
 0x17c   :  { %v370_v18 = vrot.slane %v357_v13, %v369_v15 }
 0x17e   :  { %1067 = vmatpush1.bf16.msra.mxu0 %v1528_v19  ;;  %1149 = vmatpush1.bf16.msra.mxu1 %v1531_v20  ;;  %v374_v19 = vrot.slane %v357_v13, %v373_v16 }
 0x17f   :  { %1068 = vmatprep.subr.bf16.mxu0 %v1536_v21  ;;  %1150 = vmatprep.subr.bf16.mxu1 %v1539_v22 }
 0x182   :  { %1069 = vmatpush1.bf16.msra.mxu0 %v1534_v23  ;;  %1151 = vmatpush1.bf16.msra.mxu1 %v1537_v24 }
 0x183   :  { %1070 = vmatprep.subr.bf16.mxu0 %v1542_v25  ;;  %1152 = vmatprep.subr.bf16.mxu1 %v1545_v26 }
 0x186   :  { %1071 = vmatpush1.bf16.msra.mxu0 %v1540_v27  ;;  %1153 = vmatpush1.bf16.msra.mxu1 %v1543_v28 }
 0x187   :  { %1072 = vmatprep.subr.bf16.mxu0 %v1548_v29  ;;  %1154 = vmatprep.subr.bf16.mxu1 %v1551_v30 }
 0x18a   :  { %1073 = vmatpush1.bf16.msra.mxu0 %v1546_v31  ;;  %1155 = vmatpush1.bf16.msra.mxu1 %v1549_v32 }
 0x18b   :  { %1074 = vmatprep.subr.bf16.mxu0 %v1554_v33  ;;  %1156 = vmatprep.subr.bf16.mxu1 %v1557_v34 }
 0x18e   :  { %1075 = vmatpush1.bf16.msra.mxu0 %v1552_v35  ;;  %1157 = vmatpush1.bf16.msra.mxu1 %v1555_v36 }
 0x18f   :  { %1076 = vmatprep.subr.bf16.mxu0 %v1560_v37  ;;  %1158 = vmatprep.subr.bf16.mxu1 %v1563_v38  ;;  %v1189_v38 = vld [vmem:[%s2128_s4] sm:$0x3]  ;;  %s1610_s4 = scalar_lea.vmem %s1227_s26, 64 }
 0x190   :  { %p1611_p0 = scmp.ne.s32.totalorder %s1227_s26, %s1610_s4  ;;  %p1616_p2 = scmp.lt.s32.totalorder %s1610_s4, %s1610_s4 }
 0x192   :  { %1077 = vmatpush1.bf16.msra.mxu0 %v1558_v39  ;;  %1159 = vmatpush1.bf16.msra.mxu1 %v1561_v40  ;;  %v1638_v39 = vmov 1983009808   ;;  %p1617_p3 = por %p1616_p2, %p1615_p1 }
 0x193   :  { %1078 = vmatprep.subr.bf16.mxu0 %v1566_v41  ;;  %1160 = vmatprep.subr.bf16.mxu1 %v1569_v42  ;;  %v1209_v40 = vunpack.c.l.s4 %v1638_v39  ;;  %v1194_v41 = vrot.slane %v1189_v38, %v361_v12  ;;  %v1198_v42 = vrot.slane %v1189_v38, %v365_v14 }
 0x194   :  { %p1618_p4 = pnand %p1617_p3, %p1611_p0 }
 0x196   :  { %1079 = vmatpush1.bf16.msra.mxu0 %v1564_v43  ;;  %1161 = vmatpush1.bf16.msra.mxu1 %v1567_v44  ;;  %v1210_v44 = vunpack.c.0.s8 %v1209_v40 }
 0x197   :  { %1080 = vmatprep.subr.bf16.mxu0 %v1572_v45  ;;  %1162 = vmatprep.subr.bf16.mxu1 %v1575_v46 }
 0x19a   :  { %1081 = vmatpush1.bf16.msra.mxu0 %v1570_v47  ;;  %1163 = vmatpush1.bf16.msra.mxu1 %v1573_v48 }
 0x19b   :  { %1082 = vmatprep.subr.bf16.mxu0 %v1578_v49  ;;  %1164 = vmatprep.subr.bf16.mxu1 %v1581_v50  ;;  %v1213_v50 = vsub.s32 %v1210_v44, %v1695_v8 }
 0x19e   :  { %1083 = vmatpush1.bf16.msra.mxu0 %v1576_v51  ;;  %1165 = vmatpush1.bf16.msra.mxu1 %v1579_v52 }
 0x19f   :  { %1084 = vmatprep.subr.bf16.mxu0 %v1584_v53  ;;  %1166 = vmatprep.subr.bf16.mxu1 %v1587_v54 }
 0x1a2   :  { %1085 = vmatpush1.bf16.msra.mxu0 %v1582_v55  ;;  %1167 = vmatpush1.bf16.msra.mxu1 %v1585_v56 }
 0x1a3   :  { %1086 = vmatprep.subr.bf16.mxu0 %v1590_v57  ;;  %1168 = vmatprep.subr.bf16.mxu1 %v1593_v58 }
 0x1a6   :  { %1087 = vmatpush1.bf16.msra.mxu0 %v1588_v59  ;;  %1169 = vmatpush1.bf16.msra.mxu1 %v1591_v60 }
 0x1a7   :  { %1088 = vmatprep.subr.bf16.mxu0 %v1596_v61  ;;  %1170 = vmatprep.subr.bf16.mxu1 %v1599_v62 }
 0x1aa   :  { %1089 = vmatpush1.bf16.msra.mxu0 %v1594_v63  ;;  %1171 = vmatpush1.bf16.msra.mxu1 %v1597_v0 }
 0x1ab   :  { %1090 = vmatprep.subr.bf16.mxu0 %v1602_v1  ;;  %1172 = vmatprep.subr.bf16.mxu1 %v1605_v2 }
 0x1ae   :  { %1091 = vmatpush1.bf16.msra.mxu0 %v1600_v3  ;;  %1173 = vmatpush1.bf16.msra.mxu1 %v1603_v4 }
 0x1b1   :  { %1093 = vmatmul.mubr.bf16.vlgmr.msra.gmra.mrb[8].mxu0 %v227_v5  ;;  %1175 = vmatmul.mubr.bf16.vlgmr.msra.gmra.mrb[0].mxu1 %v227_v5 }
 0x244   :  { %v1053_v6 = vpop.f32.mrb[4].mxu0 }
 0x245   :  { %v1055_v7 = vpop.f32.mrb[5].mxu0  ;;  %v1054_v20 = vadd.f32 %v1053_v6, %v362_v17 }
 0x246   :  { %v1057_v10 = vpop.f32.mrb[6].mxu0  ;;  %v1056_v21 = vadd.f32 %v1055_v7, %v366_v9 }
 0x247   :  { %v1058_v11 = vpop.f32.mrb[7].mxu0 }
 0x284   :  { %v1094_v22 = vpop.f32.mrb[8].mxu0  ;;  %v1176_v23 = vpop.f32.mrb[0].mxu1 }
 0x285   :  { %v1095_v24 = vadd.f32 %v1094_v22, %v1054_v20  ;;  %v1379_v25 = vadd.f32 %v1176_v23, %v370_v18  ;;  %v1096_v26 = vpop.f32.mrb[9].mxu0  ;;  %v1178_v27 = vpop.f32.mrb[1].mxu1 }
 0x286   :  { %v1097_v28 = vadd.f32 %v1096_v26, %v1056_v21  ;;  %v1380_v29 = vadd.f32 %v1178_v27, %v374_v19  ;;  %v1098_v30 = vpop.f32.mrb[10].mxu0  ;;  %v1180_v31 = vpop.f32.mrb[2].mxu1 }
 0x287   :  { %v1183_v32 = vmul.f32 0.5, %v1379_v25  ;;  %v1099_v33 = vpop.f32.mrb[11].mxu0  ;;  %v1181_v34 = vpop.f32.mrb[3].mxu1 }
 0x288   :  { %v1184_v35 = vmul.f32 0.5, %v1380_v29 }
 0x289   :  { %v1185_v36 = vmul.f32 1.442695, %v1183_v32 }
 0x28a   :  { %v1187_v37 = vmul.f32 1.442695, %v1184_v35 }
 0x28b   :  { %1606 = vpow2.f32 %v1185_v36 }
 0x28c   :  { %1608 = vpow2.f32 %v1187_v37 }
 0x295   :  { %v1607_v43 = vpop.eup %1606 }
 0x296   :  { %v1609_v45 = vpop.eup %1608  ;;  %v1201_v46 = vmul.f32 %v1607_v43, %v1194_v41 }
 0x297   :  { %v1202_v47 = vmul.f32 %v1609_v45, %v1198_v42 }
 0x298   :  { %v1203_v48 = vadd.f32 %v1201_v46, %v1095_v24 }
 0x299   :  { %v1204_v49 = vadd.f32 %v1202_v47, %v1097_v28 }
 0x29b   :  { %v1207_v51 = vcombine.low %v1203_v48, %v1204_v49 }
 0x29d   :  { %v1214_v52 = vrot.slane %v1207_v51, %v1213_v50 }
 0x29f   :  { %1219 = vst.msk [vmem:[#allocation7] sm:$0xf] %vm1218_vm8, %v1214_v52 }
 0x2a0   :  { %1621 = shalt.err (!%p1618_p4)
}
 0x2a1   :  { %s1622_s29 = scalar_lea.hbm %s2131_s7, 64 }
 0x2a2   :  { %p1623_p5 = scmp.ne.s32.totalorder %s2131_s7, %s1622_s29  ;;  %p1626_p6 = scmp.lt.u32.totalorder %s1622_s29, %s2131_s7 }
 0x2a4   :  { %p1628_p7 = pnand %p1626_p6, %p1623_p5 }
 0x2a6   :  { %1631 = shalt.err (!%p1628_p7)
}
 0x2a7   :  { %1229 = dma.vmem_to_hbm [thread:$0]  %s1227_s26, 64, %s2131_s7, [#allocation8]  }
 0x2a8   :  { %1632 = dma.done.wait [#allocation8], 64  }
 0x2a9   :  { %1633 = vsyncadd [#allocation8], 4294967232 }
 0x2aa   :  { %1233 = vsyncpa [#allocation8], 1 }

</bundles_post_ra>
